<compile_context>
chip_gen: v7x
topology: tpu7x:2x2x1
jax: 0.10.0
libtpu: 0.0.40
codegen_flags: <defaults>
</compile_context>

<pallas_src>
import functools

import jax
import jax.numpy as jnp
from jax.experimental import pallas as pl
from jax.experimental.pallas import tpu as pltpu


# ----------------------------------------------------------------------------
# Kernels
# ----------------------------------------------------------------------------
def _hg_conv_resident_kernel(a_ref, x_ref, xi_ref, o_ref, *, layer_nums):
    """Grid = (M_tiles,).  X fully VMEM-resident; one full-K dot per row tile."""
    ax = jnp.dot(a_ref[...], x_ref[...], preferred_element_type=jnp.float32)
    w_x = 1.0 / float(layer_nums + 1)
    w_a = float(layer_nums) / float(layer_nums + 1)
    o_ref[...] = (xi_ref[...] * w_x + ax * w_a).astype(o_ref.dtype)


def _hg_conv_streamed_kernel(a_ref, xk_ref, xi_ref, o_ref, *, layer_nums):
    """Grid = (M_tiles, K_tiles).  Accumulate A@X directly into o_ref over K."""
    k = pl.program_id(1)

    @pl.when(k == 0)
    def _():
        o_ref[...] = jnp.zeros_like(o_ref)

    o_ref[...] += jnp.dot(
        a_ref[...], xk_ref[...], preferred_element_type=jnp.float32
    )

    @pl.when(k == pl.num_programs(1) - 1)
    def _():
        w_x = 1.0 / float(layer_nums + 1)
        w_a = float(layer_nums) / float(layer_nums + 1)
        o_ref[...] = (xi_ref[...] * w_x + o_ref[...] * w_a).astype(o_ref.dtype)


# ----------------------------------------------------------------------------
# Wrapper
# ----------------------------------------------------------------------------
def _pick_tm(n):
    """MXU-friendly row tile; keep >=2 blocks on the parallel axis (v7x 2 TCs)."""
    for cand in (256, 128, 64, 32, 16, 8):
        if n % cand == 0 and (n // cand >= 2 or cand == 8):
            return cand
    return n


def _pick_tk(n):
    for cand in (512, 256, 128):
        if n % cand == 0:
            return cand
    return n


def hyper_grapy_conv(
    hg_adj_matrix,
    items_emb,
    *,
    layer_nums,
    tm=None,
    tk=None,
    vmem_budget_bytes=20 * 1024 * 1024,  # conservative for v7x's 64 MiB VMEM
):
    """Pallas implementation of HyperGrapyConv.forward.

    hg_adj_matrix: (N, N) float32 dense adjacency.
    items_emb:     (N, D) float32 item embeddings.
    returns:       (N, D) float32 == (X + layer_nums * A@X) / (layer_nums + 1).
    """
    N, N2 = hg_adj_matrix.shape
    assert N == N2
    N_x, D = items_emb.shape
    assert N_x == N

    # bf16 for the MXU operands (A and X-as-RHS); residual / epilogue in f32.
    a_bf16 = hg_adj_matrix.astype(jnp.bfloat16)
    x_bf16 = items_emb.astype(jnp.bfloat16)
    xi_f32 = items_emb.astype(jnp.float32)

    if tm is None:
        tm = _pick_tm(N)
    assert N % tm == 0

    # VMEM footprint estimate for the X-resident path (count 2 buffers each).
    resident_need = (
        2 * (tm * N * 2)      # A row slab, bf16, double-buffered
        + 2 * (N * D * 2)     # resident X, bf16
        + 2 * (tm * D * 4)    # xi residual tile, f32
        + 2 * (tm * D * 4)    # output tile, f32
    )
    use_resident = resident_need <= vmem_budget_bytes

    if use_resident:
        vmem_limit = int(min(max(2 * resident_need, 16 << 20), 48 << 20))
        kernel = functools.partial(
            _hg_conv_resident_kernel, layer_nums=layer_nums
        )
        return pl.pallas_call(
            kernel,
            out_shape=jax.ShapeDtypeStruct((N, D), jnp.float32),
            grid_spec=pl.GridSpec(
                grid=(N // tm,),
                in_specs=[
                    # A: full-K row slab for row-tile i
                    pl.BlockSpec((tm, N), lambda i: (i, 0)),
                    # X: fully resident (constant index_map -> no re-streaming)
                    pl.BlockSpec((N, D), lambda i: (0, 0)),
                    # X residual rows i (f32)
                    pl.BlockSpec((tm, D), lambda i: (i, 0)),
                ],
                out_specs=pl.BlockSpec((tm, D), lambda i: (i, 0)),
            ),
            compiler_params=pltpu.CompilerParams(
                dimension_semantics=("parallel",),
                vmem_limit_bytes=vmem_limit,
            ),
        )(a_bf16, x_bf16, xi_f32)

    # Streamed fallback for large N: tile the contraction axis, accumulate
    # directly into the (resident-over-k) f32 output block.
    if tk is None:
        tk = _pick_tk(N)
    assert N % tk == 0

    streamed_need = (
        2 * (tm * tk * 2)     # A tile, bf16
        + 2 * (tk * D * 2)    # X RHS tile, bf16
        + 2 * (tm * D * 4)    # xi residual tile, f32
        + 2 * (tm * D * 4)    # output tile, f32
    )
    vmem_limit = int(min(max(2 * streamed_need, 16 << 20), 48 << 20))

    kernel = functools.partial(_hg_conv_streamed_kernel, layer_nums=layer_nums)
    return pl.pallas_call(
        kernel,
        out_shape=jax.ShapeDtypeStruct((N, D), jnp.float32),
        grid_spec=pl.GridSpec(
            grid=(N // tm, N // tk),
            in_specs=[
                pl.BlockSpec((tm, tk), lambda i, k: (i, k)),
                pl.BlockSpec((tk, D), lambda i, k: (k, 0)),
                pl.BlockSpec((tm, D), lambda i, k: (i, 0)),
            ],
            out_specs=pl.BlockSpec((tm, D), lambda i, k: (i, 0)),
        ),
        compiler_params=pltpu.CompilerParams(
            dimension_semantics=("parallel", "arbitrary"),
            vmem_limit_bytes=vmem_limit,
        ),
    )(a_bf16, x_bf16, xi_f32)


def hyper_grapy_conv_ref(hg_adj_matrix, items_emb, *, layer_nums):
    """Literal pure-JAX translation of the PyTorch forward (for checking)."""
    item_embedding_list = [items_emb]
    for _ in range(layer_nums):
        new_items_emb = hg_adj_matrix @ items_emb
        item_embedding_list.append(new_items_emb)
    stacked = jnp.stack(item_embedding_list)
    return jnp.mean(stacked, axis=0)


if __name__ == "__main__":
    key = jax.random.PRNGKey(0)
    k_adj, k_emb = jax.random.split(key)

    layer_nums = 3          # hg_conv_num_layer
    N = 256                 # number of items / hypergraph nodes
    D = 128                 # embedding dim

    # Deterministic synthetic "sparse" adjacency (dense representation) and
    # item embeddings.
    adj_dense = jax.random.uniform(k_adj, (N, N), dtype=jnp.float32)
    mask = (adj_dense > 0.9).astype(jnp.float32)       # ~10% nonzeros
    hg_adj_matrix = adj_dense * mask
    items_emb = jax.random.normal(k_emb, (N, D), dtype=jnp.float32)

    ref = hyper_grapy_conv_ref(hg_adj_matrix, items_emb, layer_nums=layer_nums)

    # Path 1: X-resident (default for this size) — grid (N//tm,), tm=128.
    out = hyper_grapy_conv(hg_adj_matrix, items_emb, layer_nums=layer_nums)
    out = jax.block_until_ready(out)
    assert out.shape == (N, D)
    # bf16 MXU inputs (f32 accumulation) -> loosened tolerance vs f32 reference.
    assert jnp.allclose(out, ref, atol=5e-2, rtol=5e-2), "resident path mismatch"

    # Path 2: streamed K-accumulation (forced), exercises the multi-k pipeline.
    out_s = hyper_grapy_conv(
        hg_adj_matrix, items_emb, layer_nums=layer_nums,
        tm=128, tk=128, vmem_budget_bytes=0,
    )
    out_s = jax.block_until_ready(out_s)
    assert jnp.allclose(out_s, ref, atol=5e-2, rtol=5e-2), "streamed path mismatch"

    print("KERNEL_OK")
</pallas_src>

<mosaic_0001>
module attributes {stable_mosaic.version = 11 : i64} {
  func.func @_hg_conv_resident_kernel(%arg0: i32, %arg1: memref<128x256xbf16, #tpu.memory_space<vmem>>, %arg2: memref<256x128xbf16, #tpu.memory_space<vmem>>, %arg3: memref<128x128xf32, #tpu.memory_space<vmem>>, %arg4: memref<128x128xf32, #tpu.memory_space<vmem>>) attributes {dimension_semantics = [#tpu.dimension_semantics<parallel>], iteration_bounds = array<i64: 2>, scalar_prefetch = 0 : i64, scratch_operands = 0 : i64, tpu.core_type = #tpu.core_type<tc>, window_params = [{transform_indices = @transform_0, window_bounds = array<i64: 128, 256>}, {pipeline_mode = #tpu.pipeline_mode<synchronous>, transform_indices = @transform_1, window_bounds = array<i64: 256, 128>}, {transform_indices = @transform_2, window_bounds = array<i64: 128, 128>}, {transform_indices = @transform_3, window_bounds = array<i64: 128, 128>}]} {
    %c0 = arith.constant 0 : index
    %c0_0 = arith.constant 0 : index
    %0 = vector.load %arg1[%c0, %c0_0] : memref<128x256xbf16, #tpu.memory_space<vmem>>, vector<128x256xbf16>
    %c0_1 = arith.constant 0 : index
    %c0_2 = arith.constant 0 : index
    %1 = vector.load %arg2[%c0_1, %c0_2] : memref<256x128xbf16, #tpu.memory_space<vmem>>, vector<256x128xbf16>
    %cst = arith.constant dense<0.000000e+00> : vector<128x128xf32>
    %2 = tpu.matmul %0, %1, %cst {dimension_numbers = #tpu.dot_dimension_numbers<[1], [0], [0], [1], [0, 0, 1, 1], [], []>} : vector<128x256xbf16>, vector<256x128xbf16>, vector<128x128xf32> -> vector<128x128xf32>
    %c0_3 = arith.constant 0 : index
    %c0_4 = arith.constant 0 : index
    %3 = vector.load %arg3[%c0_3, %c0_4] : memref<128x128xf32, #tpu.memory_space<vmem>>, vector<128x128xf32>
    %cst_5 = arith.constant 2.500000e-01 : f32
    %4 = vector.broadcast %cst_5 : f32 to vector<128x128xf32>
    %5 = arith.mulf %3, %4 : vector<128x128xf32>
    %cst_6 = arith.constant 7.500000e-01 : f32
    %6 = vector.broadcast %cst_6 : f32 to vector<128x128xf32>
    %7 = arith.mulf %2, %6 : vector<128x128xf32>
    %8 = arith.addf %5, %7 : vector<128x128xf32>
    %c0_7 = arith.constant 0 : index
    %c0_8 = arith.constant 0 : index
    %9 = vector.load %arg4[%c0_7, %c0_8] : memref<128x128xf32, #tpu.memory_space<vmem>>, vector<128x128xf32>
    tpu.vector_store %arg4[%c0_7, %c0_8], %8 {strides = array<i32>} : memref<128x128xf32, #tpu.memory_space<vmem>>, vector<128x128xf32>,
    return
  }
  func.func @transform_0(%arg0: i32) -> (i32, i32) {
    %c0_i32 = arith.constant 0 : i32
    %c0_i32_0 = arith.constant 0 : i32
    return %arg0, %c0_i32 : i32, i32
  }
  func.func @transform_1(%arg0: i32) -> (i32, i32) {
    %c0_i32 = arith.constant 0 : i32
    %c0_i32_0 = arith.constant 0 : i32
    %c0_i32_1 = arith.constant 0 : i32
    return %c0_i32, %c0_i32_0 : i32, i32
  }
  func.func @transform_2(%arg0: i32) -> (i32, i32) {
    %c0_i32 = arith.constant 0 : i32
    %c0_i32_0 = arith.constant 0 : i32
    return %arg0, %c0_i32 : i32, i32
  }
  func.func @transform_3(%arg0: i32) -> (i32, i32) {
    %c0_i32 = arith.constant 0 : i32
    %c0_i32_0 = arith.constant 0 : i32
    return %arg0, %c0_i32 : i32, i32
  }
}

</mosaic_0001>

<bundles_post_ra>
// kernel: tpu_custom_call.1
= control target key start
LH: loop header
LB: loop body
LE: loop exit
PB: predicated region body
PF: predicated region fallthrough
CT: control target
= control target key end

     0   :  { %8 = vsyncpa [#allocation3], 0  ;;  %s1522_s0 = inlined_call_operand.hbm [shape: bf16[256,256], index: 0, kind: input, shape index: {}]   ;;  %s1523_s1 = inlined_call_operand.hbm [shape: bf16[256,128], index: 1, kind: input, shape index: {}]   ;;  %s1524_s2 = inlined_call_operand.hbm [shape: f32[256,128], index: 2, kind: input, shape index: {}]   ;;  %s1525_s3 = inlined_call_operand.hbm [shape: f32[256,128], index: 3, kind: output, shape index: {}]  }
   0x1   :  { %10 = vsyncpa [#allocation3 + $0x1], 0 }
   0x2   :  { %11 = vsyncpa [#allocation6], 0 }
   0x3   :  { %12 = vsyncpa [#allocation4], 0 }
   0x4   :  { %14 = vsyncpa [#allocation4 + $0x1], 0  ;;  %s1203_s12 = smov 0   ;;  %s1205_s13 = smov 0  }
   0x5   :  { %s1207_s14 = smov 0   ;;  %s1209_s15 = smov 0  }
   0x6 LB: > { %s1224_s16 = sadd.s32 1, %s1171_s15   ;;  %s27_s17 = sadd.s32 1, %s1167_s14  ;;  %s1171_s15 = sphi %s1209_s15, %s1548_s15   ;;  %s1167_s14 = sphi %s1207_s14, %s1547_s14   ;;  %s1163_s13 = sphi %s1205_s13, %s1546_s13   ;;  %s1159_s12 = sphi %s1203_s12, %s1545_s12  }
   0x7   : > { %s24_s18 = ssub.s32 %s1171_s15, %s1224_s16  ;;  %p34_p0 = scmp.ne.s32.totalorder %s1167_s14, %s1163_s13 }
   0x8   : > { %p25_p1 = scmp.eq.s32.totalorder %s24_s18, 0  ;;  %p35_p2 = scmp.eq.s32.totalorder %s1171_s15, 0 }
   0x9   : > { %p927_p4 = scmp.lt.s32.totalorder %s1171_s15, 2  ;;  %s150_s20 = sand.u32 1, %s1171_s15  }
   0xa   : > { %s1235_s19 = scalar_select %p25_p1, %s1167_s14, %s27_s17  }
   0xb   : > { %p36_p5 = por %p35_p2, %p34_p0  ;;  %s152_s21 = sand.u32 1, %s1167_s14  }
   0xc   : > { %s1242_s22 = sshll.u32 %s152_s21, 7  ;;  %s818_s23 = sshll.u32 %s1171_s15, 11 }
   0xd   : > { %s1250_s26 = scalar_lea.hbm %s1522_s0, %s818_s23  ;;  %s154_s27 = scalar_lea.vmem [#allocation2], %s1242_s22 }
   0xe   : > { %s162_s28 = sshll.u32 %s154_s27, 4  ;;  %p1253_p6 = pnand %p927_p4, %p36_p5  ;;  %s1257_s28 = int_to_ptr.vmem [resolvable:$true] %s162_s28 }
   0xf   : > { %s1259_s30 = scalar_lea.sflag [#allocation3], %s150_s20  ;;  %s1009_s4 = scalar_lea.hbm %s1250_s26, 2048 }
  0x10   : > { %p1010_p7 = scmp.ne.s32.totalorder %s1250_s26, %s1009_s4  ;;  %p1011_p8 = pneg %p1253_p6 }
  0x11   : > { %s1014_s7 = scalar_lea.hbm %s1522_s0, 4096  ;;  %p1015_p11 = scmp.lt.u32.totalorder %s1250_s26, %s1522_s0 }
  0x12   : > { %p1012_p9 = pnand %p1011_p8, %p1010_p7  ;;  %p1016_p12 = scmp.lt.u32.totalorder %s1014_s7, %s1009_s4 }
  0x13   : > { %p1018_p1 = scmp.lt.u32.totalorder %s1009_s4, %s1250_s26 }
  0x14   : > { %p1013_p10 = pneg %p1012_p9  ;;  %p1017_p13 = por %p1016_p12, %p1015_p11 }
  0x16   : > { %p1019_p2 = por %p1018_p1, %p1017_p13 }
  0x18   : > { %p1020_p4 = pnand %p1019_p2, %p1013_p10 }
  0x1a   : > { %1023 = shalt.err (!%p1020_p4)
}
  0x1b   : > { %s1024_s10 = scalar_lea.vmem %s1257_s28, 2048  ;;  %s1173_s11 = smov [#allocation2]  }
  0x1c   : > { %p1025_p5 = scmp.ne.s32.totalorder %s1257_s28, %s1024_s10  ;;  %s1029_s17 = sshll.u32 %s1173_s11, 4  ;;  %s1030_s17 = int_to_ptr.vmem [resolvable:$false] %s1029_s17 }
  0x1d   : > { %s1031_s18 = scalar_lea.vmem %s1030_s17, 4096  ;;  %p1032_p3 = scmp.lt.s32.totalorder %s1257_s28, %s1030_s17 }
  0x1e   : > { %p1027_p7 = pnand %p1025_p5, %p1011_p8  ;;  %p1033_p11 = scmp.lt.s32.totalorder %s1031_s18, %s1024_s10 }
  0x20   : > { %p1028_p9 = pneg %p1027_p7  ;;  %p1034_p12 = por %p1033_p11, %p1032_p3 }
  0x22   : > { %p1035_p13 = pnand %p1034_p12, %p1028_p9 }
  0x24   : > { %1038 = shalt.err (!%p1035_p13)
}
  0x25   : > { %s1174_s20 = smov 128   ;;  %s1175_s21 = smov 8  }
  0x26   : > { %918 = dma.hbm_to_vmem [thread:$0]  (!%p1253_p6), %s1250_s26, 2048, %s1257_s28, %s1259_s30, %s1174_s20, %s1174_s20, %s1175_s21  }
  0x27   : > { %s1295_s27 = scalar_lea.hbm %s1524_s2, %s818_s23  ;;  %s176_s4 = scalar_lea.vmem [#allocation7], %s1242_s22 }
  0x28   : > { %s183_s5 = sshll.u32 %s176_s4, 4  ;;  %s1299_s6 = sadd.s32 4294967295, %s1171_s15   ;;  %s1325_s5 = int_to_ptr.vmem [resolvable:$true] %s183_s5 }
  0x29   : > { %s764_s7 = sadd.s32 4294967294, %s1171_s15   ;;  %p40_p3 = scmp.ne.s32.totalorder %s1163_s13, %s1159_s12 }
  0x2a   : > { %p1526_p10 = scmp.eq.s32.totalorder %s1299_s6, 0  ;;  %p111_p1 = scmp.eq.s32.totalorder %s1299_s6, 1 }
  0x2b   : > { %p117_p2 = scmp.eq.s32.totalorder %s764_s7, 1  ;;  %p765_p5 = scmp.ge.s32.totalorder %s1171_s15, 1 }
  0x2c   : > { %p1308_p4 = por %p1526_p10, %p40_p3  ;;  %p1316_p7 = por %p111_p1, %p34_p0 }
  0x2d   : > { %p1320_p9 = por %p117_p2, %p40_p3  ;;  %p124_p11 = scmp.lt.s32.totalorder %s1171_s15, 3 }
  0x2e   : > { %s1531_s26 = scalar_select %p1308_p4, 1, 0 }
  0x2f   : > { %s1532_s22 = scalar_select %p1316_p7, 1, 0 }
  0x30   : > { %s1533_s23 = scalar_select %p1320_p9, 1, 0 }
  0x31   : > { %p1327_p12 = pnand %p765_p5, %p124_p11  ;;  %s1176_s8 = smov [#allocation5]  }
  0x32   : > { %s136_s9 = sshll.u32 %s1176_s8, 4  ;;  %s1039_s10 = scalar_lea.hbm %s1295_s27, 2048  ;;  %s1333_s9 = int_to_ptr.vmem [resolvable:$true] %s136_s9 }
  0x33   : > { %s1534_s28 = scalar_select %p1327_p12, 1, 0 }
  0x34   : > { %p1040_p13 = scmp.ne.s32.totalorder %s1295_s27, %s1039_s10  ;;  %s1044_s18 = scalar_lea.hbm %s1524_s2, 4096 }
  0x35   : > { %p1045_p2 = scmp.lt.u32.totalorder %s1295_s27, %s1524_s2  ;;  %p1046_p5 = scmp.lt.u32.totalorder %s1044_s18, %s1039_s10 }
  0x36   : > { %p1042_p3 = pnand %p1040_p13, %p1011_p8  ;;  %p1048_p10 = scmp.lt.u32.totalorder %s1039_s10, %s1295_s27 }
  0x37   : > { %p1047_p11 = por %p1046_p5, %p1045_p2 }
  0x38   : > { %p1043_p1 = pneg %p1042_p3 }
  0x39   : > { %p1049_p0 = por %p1048_p10, %p1047_p11 }
  0x3b   : > { %p1050_p9 = pnand %p1049_p0, %p1043_p1 }
  0x3d   : > { %1053 = shalt.err (!%p1050_p9)
}
  0x3e   : > { %s1054_s4 = scalar_lea.vmem %s1325_s5, 2048  ;;  %s1177_s7 = smov [#allocation7]  }
  0x3f   : > { %p1055_p13 = scmp.ne.s32.totalorder %s1325_s5, %s1054_s4  ;;  %s1059_s8 = sshll.u32 %s1177_s7, 4  ;;  %s1060_s8 = int_to_ptr.vmem [resolvable:$false] %s1059_s8 }
  0x40   : > { %s1061_s11 = scalar_lea.vmem %s1060_s8, 4096  ;;  %p1062_p4 = scmp.lt.s32.totalorder %s1325_s5, %s1060_s8 }
  0x41   : > { %p1057_p3 = pnand %p1055_p13, %p1011_p8  ;;  %p1063_p2 = scmp.lt.s32.totalorder %s1061_s11, %s1054_s4 }
  0x43   : > { %p1058_p7 = pneg %p1057_p3  ;;  %p1064_p5 = por %p1063_p2, %p1062_p4 }
  0x45   : > { %p1065_p10 = pnand %p1064_p5, %p1058_p7 }
  0x47   : > { %1068 = shalt.err (!%p1065_p10)
}
  0x48   : > { %921 = dma.hbm_to_vmem [thread:$0]  (!%p1253_p6), %s1295_s27, 2048, %s1325_s5, %s1259_s30, %s1174_s20, %s1174_s20, %s1175_s21  }
  0x49   : > { %p1535_p8 = scmp.eq.s32.totalorder %s1299_s6, 0  ;;  %p1536_p9 = pneg %p1327_p12 }
  0x4a   : > { %s1069_s29 = scalar_lea.hbm %s1523_s1, 2048 }
  0x4b   : > { %p1367_p0 = pnand %p1536_p9, %p1535_p8  ;;  %p1070_p4 = scmp.ne.s32.totalorder %s1523_s1, %s1069_s29 }
  0x4c   : > { %p1076_p11 = scmp.lt.u32.totalorder %s1069_s29, %s1523_s1 }
  0x4d   : > { %p1071_p7 = pneg %p1367_p0 }
  0x4f   : > { %p1072_p1 = pnand %p1071_p7, %p1070_p4 }
  0x51   : > { %p1073_p6 = pneg %p1072_p1 }
  0x53   : > { %p1078_p13 = pnand %p1076_p11, %p1073_p6 }
  0x55   : > { %1081 = shalt.err (!%p1078_p13)
}
  0x56   : > { %s1082_s21 = scalar_lea.vmem %s1333_s9, 2048  ;;  %p1090_p10 = scmp.lt.s32.totalorder %s1333_s9, %s1333_s9 }
  0x57   : > { %p1083_p3 = scmp.ne.s32.totalorder %s1333_s9, %s1082_s21  ;;  %p1091_p8 = scmp.lt.s32.totalorder %s1082_s21, %s1082_s21 }
  0x59   : > { %p1085_p2 = pnand %p1083_p3, %p1071_p7  ;;  %p1092_p9 = por %p1091_p8, %p1090_p10 }
  0x5b   : > { %p1086_p5 = pneg %p1085_p2 }
  0x5d   : > { %p1093_p12 = pnand %p1092_p9, %p1086_p5 }
  0x5f   : > { %1096 = shalt.err (!%p1093_p12)
}
  0x60   : > { %s1178_s27 = smov 64   ;;  %s1179_s5 = smov 4  }
  0x61   : > { %914 = dma.hbm_to_vmem [thread:$0]  (!%p1367_p0), %s1523_s1, 2048, %s1333_s9, [#allocation6], %s1178_s27, %s1178_s27, %s1179_s5  }
  0x62   : > { %p1538_p4 = scmp.ne.s32.totalorder %s1534_s28, 0 }
  0x63   : > { %s197_s8 = sand.u32 (!%p1538_p4), 1, %s1299_s6   ;;  %s199_s11 = sand.u32 (!%p1538_p4), 1, %s1163_s13  }
  0x64   : > { %195 = sbr.rel (%p1538_p4) target bundleno = 407 (0x197), region = 32  ;;  %s1398_s17 = sshll.u32 (!%p1538_p4), %s199_s11, 7 }
  0x65   : > { %s198_s18 = scalar_lea.sflag (!%p1538_p4), [#allocation3], %s197_s8  ;;  %s1401_s29 = scalar_lea.vmem (!%p1538_p4), [#allocation2], %s1398_s17 }
  0x66   : > { %p1539_p12 = scmp.ne.s32.totalorder (!%p1538_p4), %s1531_s26, 0 }
  0x6b   : > { %1142 = dma.done.wait (%p1539_p12), %s198_s18, 2048  }
  0x6c   : > { %1144 = vsyncadd (%p1539_p12), %s198_s18, 4294965248  ;;  %p1540_p0 = scmp.eq.s32.totalorder %s1299_s6, 0 }
  0x6e   : > { %1146 = dma.done.wait (%p1540_p0), [#allocation6], 2048   ;;  %p1541_p7 = pmov %p1540_p0 }
  0x6f   : > { %s1412_s28 = scalar_lea.vmem [#allocation7], %s1398_s17 }
  0x70   : > { %1148 = vsyncadd (%p1541_p7), [#allocation6], 4294965248 }
  0x71   : > { %1150 = dma.done.wait (%p1539_p12), %s198_s18, 2048  }
  0x72   : > { %1152 = vsyncadd (%p1539_p12), %s198_s18, 4294965248  ;;  %v969_v0 = vld [vmem:[#allocation5 + $0x40] sm:$0xff]   ;;  %v971_v2 = vld [vmem:[#allocation5 + $0x48] sm:$0xff]   ;;  %s1441_s26 = scalar_lea.vmem [#allocation8], %s1398_s17  ;;  %s820_s9 = sshll.u32 %s1299_s6, 11 }
  0x73   : > { %v970_v1 = vld [vmem:[#allocation5] sm:$0xff]   ;;  %821 = vmatprep.subr.bf16.mxu0 %v969_v0  ;;  %885 = vmatprep.subr.bf16.mxu1 %v969_v0  ;;  %v972_v3 = vld [vmem:[#allocation5 + $0x8] sm:$0xff]   ;;  %v973_v4 = vld [vmem:[#allocation5 + $0x50] sm:$0xff]   ;;  %s661_s10 = sshll.u32 %s1441_s26, 4  ;;  %s1470_s30 = scalar_lea.hbm %s1525_s3, %s820_s9  ;;  %s1472_s10 = int_to_ptr.vmem [resolvable:$true] %s661_s10 }
  0x74   : > { %822 = vmatpush3.bf16.msra.mxu0 %v970_v1  ;;  %893 = vmatpush3.bf16.msra.mxu1 %v970_v1  ;;  %v974_v5 = vld [vmem:[#allocation5 + $0x10] sm:$0xff]   ;;  %v975_v6 = vld [vmem:[#allocation5 + $0x58] sm:$0xff]   ;;  %v977_v8 = vld [vmem:[#allocation5 + $0x60] sm:$0xff]   ;;  %s1480_s6 = scalar_lea.sflag [#allocation4], %s199_s11  ;;  %s1097_s20 = scalar_lea.vmem %s1472_s10, 2048 }
  0x75   : > { %823 = vmatprep.subr.bf16.mxu0 %v971_v2  ;;  %886 = vmatprep.subr.bf16.mxu1 %v971_v2  ;;  %v976_v7 = vld [vmem:[#allocation5 + $0x18] sm:$0xff]   ;;  %v978_v9 = vld [vmem:[#allocation5 + $0x20] sm:$0xff]   ;;  %v979_v10 = vld [vmem:[#allocation5 + $0x68] sm:$0xff]   ;;  %p1098_p1 = scmp.ne.s32.totalorder %s1472_s10, %s1097_s20  ;;  %p1542_p6 = scmp.ne.s32.totalorder %s1532_s22, 0 }
  0x76   : > { %v987_v11 = vld [vmem:[%s1401_s29 + $0x4] ss:$8 sps:$4 sm:$0xff]   ;;  %v981_v14 = vld [vmem:[#allocation5 + $0x70] sm:$0xff]   ;;  %v983_v16 = vld [vmem:[#allocation5 + $0x78] sm:$0xff]   ;;  %s1180_s21 = smov [#allocation8]  }
  0x77   : > { %v990_v12 = vld [vmem:[%s1401_s29 + $0x44] ss:$8 sps:$4 sm:$0xff]   ;;  %502 = vmatprep.mubr.bf16.mxu0 %v987_v11  ;;  %v982_v15 = vld [vmem:[#allocation5 + $0x30] sm:$0xff]   ;;  %v984_v17 = vld [vmem:[#allocation5 + $0x38] sm:$0xff]   ;;  %p1099_p11 = pnand %p1098_p1, %p1542_p6  ;;  %s1101_s27 = sshll.u32 %s1180_s21, 4  ;;  %s1102_s27 = int_to_ptr.vmem [resolvable:$false] %s1101_s27 }
  0x78   : > { %824 = vmatpush3.bf16.msra.mxu0 %v972_v3  ;;  %894 = vmatpush3.bf16.msra.mxu1 %v972_v3  ;;  %v980_v13 = vld [vmem:[#allocation5 + $0x28] sm:$0xff]   ;;  %v991_v20 = vld [vmem:[%s1401_s29 + $0x14] ss:$8 sps:$4 sm:$0xff]   ;;  %v995_v22 = vld [vmem:[%s1401_s29 + $0x10] ss:$8 sps:$4 sm:$0xff]   ;;  %s1103_s5 = scalar_lea.vmem %s1102_s27, 4096  ;;  %p1104_p3 = scmp.lt.s32.totalorder %s1472_s10, %s1102_s27 }
  0x79   : > { %825 = vmatprep.subr.bf16.mxu0 %v973_v4  ;;  %887 = vmatprep.subr.bf16.mxu1 %v973_v4  ;;  %v985_v18 = vld [vmem:[%s1401_s29] ss:$8 sps:$4 sm:$0xff]   ;;  %v993_v21 = vld [vmem:[%s1401_s29 + $0x54] ss:$8 sps:$4 sm:$0xff]   ;;  %v996_v23 = vld [vmem:[%s1401_s29 + $0x50] ss:$8 sps:$4 sm:$0xff]   ;;  %p1100_p13 = pneg %p1099_p11  ;;  %p1105_p2 = scmp.lt.s32.totalorder %s1103_s5, %s1097_s20 }
  0x7a   : > { %534 = vmatprep.mubr.bf16.mxu1 %v990_v12  ;;  %v988_v19 = vld [vmem:[%s1401_s29 + $0x40] ss:$8 sps:$4 sm:$0xff]   ;;  %v997_v24 = vld [vmem:[%s1401_s29 + $0x24] ss:$8 sps:$4 sm:$0xff]   ;;  %v1003_v28 = vld [vmem:[%s1401_s29 + $0x34] ss:$8 sps:$4 sm:$0xff]  }
  0x7b   : > { %v999_v25 = vld [vmem:[%s1401_s29 + $0x64] ss:$8 sps:$4 sm:$0xff]   ;;  %v1001_v26 = vld [vmem:[%s1401_s29 + $0x20] ss:$8 sps:$4 sm:$0xff]   ;;  %v1005_v29 = vld [vmem:[%s1401_s29 + $0x74] ss:$8 sps:$4 sm:$0xff]   ;;  %p1106_p5 = por %p1105_p2, %p1104_p3 }
  0x7c   : > { %826 = vmatpush3.bf16.msra.mxu0 %v974_v5  ;;  %895 = vmatpush3.bf16.msra.mxu1 %v974_v5  ;;  %v1002_v27 = vld [vmem:[%s1401_s29 + $0x60] ss:$8 sps:$4 sm:$0xff]   ;;  %v1007_v30 = vld [vmem:[%s1401_s29 + $0x30] ss:$8 sps:$4 sm:$0xff]  }
  0x7d   : > { %827 = vmatprep.subr.bf16.mxu0 %v975_v6  ;;  %888 = vmatprep.subr.bf16.mxu1 %v975_v6  ;;  %v1008_v31 = vld [vmem:[%s1401_s29 + $0x70] ss:$8 sps:$4 sm:$0xff]   ;;  %v567_v32 = vld [vmem:[%s1412_s28] sm:$0xff]  ;;  %v568_v36 = vld [vmem:[%s1412_s28 + $0x8] sm:$0xff]  ;;  %p1107_p10 = pnand %p1106_p5, %p1100_p13 }
  0x7e   : > { %v575_v33 = vld [vmem:[%s1412_s28 + $0x40] sm:$0xff]  ;;  %v576_v37 = vld [vmem:[%s1412_s28 + $0x48] sm:$0xff]  ;;  %v583_v41 = vmul.f32 0.25, %v567_v32  ;;  %v584_v47 = vmul.f32 0.25, %v568_v36  ;;  %v569_v58 = vld [vmem:[%s1412_s28 + $0x10] sm:$0xff] }
  0x7f   : > { %v591_v43 = vmul.f32 0.25, %v575_v33  ;;  %v592_v49 = vmul.f32 0.25, %v576_v37  ;;  %v577_v59 = vld [vmem:[%s1412_s28 + $0x50] sm:$0xff]  ;;  %v570_v0 = vld [vmem:[%s1412_s28 + $0x18] sm:$0xff]  ;;  %v585_v5 = vmul.f32 0.25, %v569_v58 }
  0x80   : > { %828 = vmatpush3.bf16.msra.mxu0 %v976_v7  ;;  %896 = vmatpush3.bf16.msra.mxu1 %v976_v7  ;;  %v578_v1 = vld [vmem:[%s1412_s28 + $0x58] sm:$0xff]  ;;  %v593_v7 = vmul.f32 0.25, %v577_v59  ;;  %v586_v11 = vmul.f32 0.25, %v570_v0 }
  0x81   : > { %829 = vmatprep.subr.bf16.mxu0 %v977_v8  ;;  %889 = vmatprep.subr.bf16.mxu1 %v977_v8 }
  0x84   : > { %830 = vmatpush3.bf16.msra.mxu0 %v978_v9  ;;  %897 = vmatpush3.bf16.msra.mxu1 %v978_v9 }
  0x85   : > { %831 = vmatprep.subr.bf16.mxu0 %v979_v10  ;;  %890 = vmatprep.subr.bf16.mxu1 %v979_v10 }
  0x88   : > { %832 = vmatpush3.bf16.msra.mxu0 %v980_v13  ;;  %898 = vmatpush3.bf16.msra.mxu1 %v980_v13  ;;  %v594_v13 = vmul.f32 0.25, %v578_v1 }
  0x89   : > { %833 = vmatprep.subr.bf16.mxu0 %v981_v14  ;;  %891 = vmatprep.subr.bf16.mxu1 %v981_v14 }
  0x8c   : > { %834 = vmatpush3.bf16.msra.mxu0 %v982_v15  ;;  %899 = vmatpush3.bf16.msra.mxu1 %v982_v15 }
  0x8d   : > { %835 = vmatprep.subr.bf16.mxu0 %v983_v16  ;;  %892 = vmatprep.subr.bf16.mxu1 %v983_v16 }
  0x90   : > { %836 = vmatpush3.bf16.msra.mxu0 %v984_v17  ;;  %900 = vmatpush3.bf16.msra.mxu1 %v984_v17 }
  0x93   : > { %503 = vmatmul.mubr.bf16.vlgmr.msra.gmra.mrb[0].mxu0 %v985_v18  ;;  %535 = vmatmul.mubr.bf16.vlgmr.msra.gmra.mrb[0].mxu1 %v988_v19 }
  0x94   : > { %510 = vmatprep.mubr.bf16.mxu0 %v991_v20  ;;  %542 = vmatprep.mubr.bf16.mxu1 %v993_v21 }
  0x9b   : > { %511 = vmatmul.mubr.bf16.gmra.mrb[4].mxu0 %v995_v22  ;;  %543 = vmatmul.mubr.bf16.gmra.mrb[4].mxu1 %v996_v23  ;;  %v571_v22 = vld [vmem:[%s1412_s28 + $0x20] sm:$0xff] }
  0x9c   : > { %518 = vmatprep.mubr.bf16.mxu0 %v997_v24  ;;  %550 = vmatprep.mubr.bf16.mxu1 %v999_v25  ;;  %v579_v23 = vld [vmem:[%s1412_s28 + $0x60] sm:$0xff]  ;;  %v587_v33 = vmul.f32 0.25, %v571_v22 }
  0xa3   : > { %519 = vmatmul.mubr.bf16.gmra.mrb[8].mxu0 %v1001_v26  ;;  %551 = vmatmul.mubr.bf16.gmra.mrb[8].mxu1 %v1002_v27 }
  0xa4   : > { %526 = vmatprep.mubr.bf16.mxu0 %v1003_v28  ;;  %558 = vmatprep.mubr.bf16.mxu1 %v1005_v29  ;;  %v572_v28 = vld [vmem:[%s1412_s28 + $0x28] sm:$0xff] }
  0xa5   : > { %v580_v29 = vld [vmem:[%s1412_s28 + $0x68] sm:$0xff] }
  0xab   : > { %527 = vmatmul.mubr.bf16.gmra.mrb[12].mxu0 %v1007_v30  ;;  %559 = vmatmul.mubr.bf16.gmra.mrb[12].mxu1 %v1008_v31 }
 0x166   : > { %v837_v34 = vpop.f32.mrb[0].mxu0  ;;  %v861_v35 = vpop.f32.mrb[0].mxu1 }
 0x167   : > { %v838_v38 = vpop.f32.mrb[1].mxu0  ;;  %v862_v39 = vpop.f32.mrb[1].mxu1 }
 0x168   : > { %v839_v40 = vadd.f32 %v838_v38, %v837_v34  ;;  %v863_v42 = vadd.f32 %v862_v39, %v861_v35  ;;  %v840_v44 = vpop.f32.mrb[2].mxu0  ;;  %v864_v45 = vpop.f32.mrb[2].mxu1  ;;  %v595_v35 = vmul.f32 0.25, %v579_v23  ;;  %v588_v39 = vmul.f32 0.25, %v572_v28 }
 0x169   : > { %v841_v46 = vpop.f32.mrb[3].mxu0  ;;  %v865_v48 = vpop.f32.mrb[3].mxu1 }
 0x16a   : > { %v599_v50 = vmul.f32 0.75, %v839_v40  ;;  %v607_v51 = vmul.f32 0.75, %v863_v42  ;;  %v842_v52 = vadd.f32 %v841_v46, %v840_v44  ;;  %v866_v53 = vadd.f32 %v865_v48, %v864_v45 }
 0x16c   : > { %v615_v54 = vadd.f32 %v599_v50, %v583_v41  ;;  %v623_v55 = vadd.f32 %v607_v51, %v591_v43  ;;  %v600_v56 = vmul.f32 0.75, %v842_v52  ;;  %v608_v57 = vmul.f32 0.75, %v866_v53  ;;  %v573_v50 = vld [vmem:[%s1412_s28 + $0x30] sm:$0xff] }
 0x16d   : > { %v596_v41 = vmul.f32 0.25, %v580_v29  ;;  %v581_v51 = vld [vmem:[%s1412_s28 + $0x70] sm:$0xff] }
 0x16e   : > { %631 = vst [vmem:[%s1441_s26] sm:$0xff] %v615_v54  ;;  %639 = vst [vmem:[%s1441_s26 + $0x40] sm:$0xff] %v623_v55  ;;  %v616_v60 = vadd.f32 %v600_v56, %v584_v47  ;;  %v624_v61 = vadd.f32 %v608_v57, %v592_v49  ;;  %v843_v62 = vpop.f32.mrb[4].mxu0  ;;  %v867_v63 = vpop.f32.mrb[4].mxu1  ;;  %v574_v56 = vld [vmem:[%s1412_s28 + $0x38] sm:$0xff] }
 0x16f   : > { %v844_v2 = vpop.f32.mrb[5].mxu0  ;;  %v868_v3 = vpop.f32.mrb[5].mxu1  ;;  %v582_v57 = vld [vmem:[%s1412_s28 + $0x78] sm:$0xff] }
 0x170   : > { %632 = vst [vmem:[%s1441_s26 + $0x8] sm:$0xff] %v616_v60  ;;  %640 = vst [vmem:[%s1441_s26 + $0x48] sm:$0xff] %v624_v61  ;;  %v845_v4 = vadd.f32 %v844_v2, %v843_v62  ;;  %v869_v6 = vadd.f32 %v868_v3, %v867_v63  ;;  %v846_v8 = vpop.f32.mrb[6].mxu0  ;;  %v870_v9 = vpop.f32.mrb[6].mxu1  ;;  %v589_v61 = vmul.f32 0.25, %v573_v50  ;;  %v597_v63 = vmul.f32 0.25, %v581_v51 }
 0x171   : > { %v847_v10 = vpop.f32.mrb[7].mxu0  ;;  %v871_v12 = vpop.f32.mrb[7].mxu1  ;;  %v590_v3 = vmul.f32 0.25, %v574_v56 }
 0x172   : > { %v601_v14 = vmul.f32 0.75, %v845_v4  ;;  %v609_v15 = vmul.f32 0.75, %v869_v6  ;;  %v848_v16 = vadd.f32 %v847_v10, %v846_v8  ;;  %v872_v17 = vadd.f32 %v871_v12, %v870_v9 }
 0x174   : > { %v617_v18 = vadd.f32 %v601_v14, %v585_v5  ;;  %v625_v19 = vadd.f32 %v609_v15, %v593_v7  ;;  %v602_v20 = vmul.f32 0.75, %v848_v16  ;;  %v610_v21 = vmul.f32 0.75, %v872_v17 }
 0x175   : > { %v598_v5 = vmul.f32 0.25, %v582_v57 }
 0x176   : > { %633 = vst [vmem:[%s1441_s26 + $0x10] sm:$0xff] %v617_v18  ;;  %641 = vst [vmem:[%s1441_s26 + $0x50] sm:$0xff] %v625_v19  ;;  %v618_v24 = vadd.f32 %v602_v20, %v586_v11  ;;  %v626_v25 = vadd.f32 %v610_v21, %v594_v13  ;;  %v849_v26 = vpop.f32.mrb[8].mxu0  ;;  %v873_v27 = vpop.f32.mrb[8].mxu1 }
 0x177   : > { %v850_v30 = vpop.f32.mrb[9].mxu0  ;;  %v874_v31 = vpop.f32.mrb[9].mxu1 }
 0x178   : > { %634 = vst [vmem:[%s1441_s26 + $0x18] sm:$0xff] %v618_v24  ;;  %642 = vst [vmem:[%s1441_s26 + $0x58] sm:$0xff] %v626_v25  ;;  %v851_v32 = vadd.f32 %v850_v30, %v849_v26  ;;  %v875_v34 = vadd.f32 %v874_v31, %v873_v27  ;;  %v852_v36 = vpop.f32.mrb[10].mxu0  ;;  %v876_v37 = vpop.f32.mrb[10].mxu1 }
 0x179   : > { %v853_v38 = vpop.f32.mrb[11].mxu0  ;;  %v877_v40 = vpop.f32.mrb[11].mxu1 }
 0x17a   : > { %v603_v42 = vmul.f32 0.75, %v851_v32  ;;  %v611_v43 = vmul.f32 0.75, %v875_v34  ;;  %v854_v44 = vadd.f32 %v853_v38, %v852_v36  ;;  %v878_v45 = vadd.f32 %v877_v40, %v876_v37 }
 0x17c   : > { %v619_v46 = vadd.f32 %v603_v42, %v587_v33  ;;  %v627_v47 = vadd.f32 %v611_v43, %v595_v35  ;;  %v604_v48 = vmul.f32 0.75, %v854_v44  ;;  %v612_v49 = vmul.f32 0.75, %v878_v45 }
 0x17e   : > { %635 = vst [vmem:[%s1441_s26 + $0x20] sm:$0xff] %v619_v46  ;;  %643 = vst [vmem:[%s1441_s26 + $0x60] sm:$0xff] %v627_v47  ;;  %v620_v52 = vadd.f32 %v604_v48, %v588_v39  ;;  %v628_v53 = vadd.f32 %v612_v49, %v596_v41  ;;  %v855_v54 = vpop.f32.mrb[12].mxu0  ;;  %v879_v55 = vpop.f32.mrb[12].mxu1 }
 0x17f   : > { %v856_v58 = vpop.f32.mrb[13].mxu0  ;;  %v880_v59 = vpop.f32.mrb[13].mxu1 }
 0x180   : > { %636 = vst [vmem:[%s1441_s26 + $0x28] sm:$0xff] %v620_v52  ;;  %644 = vst [vmem:[%s1441_s26 + $0x68] sm:$0xff] %v628_v53  ;;  %v857_v60 = vadd.f32 %v856_v58, %v855_v54  ;;  %v881_v62 = vadd.f32 %v880_v59, %v879_v55  ;;  %v858_v0 = vpop.f32.mrb[14].mxu0  ;;  %v882_v1 = vpop.f32.mrb[14].mxu1 }
 0x181   : > { %v859_v2 = vpop.f32.mrb[15].mxu0  ;;  %v883_v4 = vpop.f32.mrb[15].mxu1 }
 0x182   : > { %v605_v6 = vmul.f32 0.75, %v857_v60  ;;  %v613_v7 = vmul.f32 0.75, %v881_v62  ;;  %v860_v8 = vadd.f32 %v859_v2, %v858_v0  ;;  %v884_v9 = vadd.f32 %v883_v4, %v882_v1 }
 0x184   : > { %v621_v10 = vadd.f32 %v605_v6, %v589_v61  ;;  %v629_v11 = vadd.f32 %v613_v7, %v597_v63  ;;  %v606_v12 = vmul.f32 0.75, %v860_v8  ;;  %v614_v13 = vmul.f32 0.75, %v884_v9 }
 0x186   : > { %637 = vst [vmem:[%s1441_s26 + $0x30] sm:$0xff] %v621_v10  ;;  %645 = vst [vmem:[%s1441_s26 + $0x70] sm:$0xff] %v629_v11  ;;  %v622_v14 = vadd.f32 %v606_v12, %v590_v3  ;;  %v630_v15 = vadd.f32 %v614_v13, %v598_v5 }
 0x188   : > { %638 = vst [vmem:[%s1441_s26 + $0x38] sm:$0xff] %v622_v14  ;;  %646 = vst [vmem:[%s1441_s26 + $0x78] sm:$0xff] %v630_v15 }
 0x189   : > { %1110 = shalt.err (!%p1107_p10)
}
 0x18a   : > { %s1111_s4 = scalar_lea.hbm %s1470_s30, 2048  ;;  %s1115_s11 = scalar_lea.hbm %s1525_s3, 4096 }
 0x18b   : > { %p1112_p8 = scmp.ne.s32.totalorder %s1470_s30, %s1111_s4  ;;  %p1116_p12 = scmp.lt.u32.totalorder %s1470_s30, %s1525_s3 }
 0x18c   : > { %p1117_p0 = scmp.lt.u32.totalorder %s1115_s11, %s1111_s4  ;;  %p1119_p1 = scmp.lt.u32.totalorder %s1111_s4, %s1470_s30 }
 0x18d   : > { %p1113_p9 = pnand %p1112_p8, %p1542_p6 }
 0x18e   : > { %p1118_p7 = por %p1117_p0, %p1116_p12 }
 0x18f   : > { %p1114_p4 = pneg %p1113_p9 }
 0x190   : > { %p1120_p11 = por %p1119_p1, %p1118_p7 }
 0x192   : > { %p1121_p13 = pnand %p1120_p11, %p1114_p4 }
 0x194   : > { %1124 = shalt.err (!%p1121_p13)
}
 0x195   : > { %s1181_s29 = smov 128   ;;  %s1182_s28 = smov 8  }
 0x196   : > { %909 = dma.vmem_to_hbm [thread:$0]  (%p1542_p6), %s1472_s10, 2048, %s1470_s30, %s1480_s6, %s1181_s29, %s1181_s29, %s1182_s28  }
 0x197 PF: > { %s676_s26 = sand.u32 1, %s1159_s12   ;;  %p1543_p3 = scmp.ne.s32.totalorder %s1533_s23, 0 }
 0x198   : > { %p1544_p2 = scmp.ge.s32.totalorder %s1171_s15, 2  ;;  %s677_s9 = scalar_lea.sflag [#allocation4], %s676_s26 }
 0x19a   : > { %p923_p5 = pnand %p1544_p2, %p1543_p3 }
 0x19c   : > { %1154 = dma.done.wait (!%p923_p5), %s677_s9, 2048  }
 0x19d   : > { %1156 = vsyncadd (!%p923_p5), %s677_s9, 4294965248  ;;  %p17_p10 = scmp.ge.s32.totalorder %s1224_s16, 4   ;;  %s1545_s12 = smov %s1163_s13 }
 0x19e   : > { %s1546_s13 = smov %s1167_s14  ;;  %s1547_s14 = smov %s1235_s19 }
 0x19f   : > { %s1548_s15 = smov %s1224_s16  ;;  %19 = sbr.rel (!%p17_p10) target bundleno = 6 (0x6), region = 92 }
 0x1a6   :  { %682 = vsyncpa [#allocation3], 1 }
 0x1a7   :  { %684 = vsyncpa [#allocation3 + $0x1], 1 }
 0x1a8   :  { %685 = vsyncpa [#allocation6], 1 }
 0x1a9   :  { %686 = vsyncpa [#allocation4], 1 }
 0x1aa   :  { %688 = vsyncpa [#allocation4 + $0x1], 1 }

</bundles_post_ra>
